<compile_context>
chip_gen: v6e
topology: v6e:2x2x1
jax: 0.10.0
libtpu: 0.0.40
codegen_flags: <defaults>
</compile_context>

<pallas_src>
import functools

import jax
import jax.numpy as jnp
from jax.experimental import pallas as pl
from jax.experimental.pallas import tpu as pltpu

C_PAD = 128  # classifier logits padded to one full 128-lane vreg


# --------------------------------------------------------------------------
# small helpers
# --------------------------------------------------------------------------
def _layernorm(x, g, b, eps):
    mu = jnp.mean(x, axis=-1, keepdims=True)
    var = jnp.mean(jnp.square(x - mu), axis=-1, keepdims=True)
    return (x - mu) * jax.lax.rsqrt(var + eps) * g + b


def _gelu(x):
    # tanh-approx GELU.
    # TODO(synk): HF BERT default is the exact erf-based GELU; logits differ slightly.
    c = jnp.float32(0.7978845608028654)  # sqrt(2/pi)
    return 0.5 * x * (1.0 + jnp.tanh(c * (x + 0.044715 * x * x * x)))


def _scoped_vmem_limit():
    """Raise the scoped-VMEM limit above the 16/32 MiB defaults, staying well
    under physical capacity (64 MiB on v7x, 128 MiB on v5e/v6e)."""
    try:
        cap = pltpu.get_tpu_info().vmem_capacity_bytes
    except Exception:
        cap = 64 * 1024 * 1024
    return int(cap * 3 // 4)


def _resident(shape):
    """BlockSpec for a weight/bias that is constant over the batch grid:
    fetched once, kept VMEM-resident, single-buffered (no wasted double-buffer)."""
    return pl.BlockSpec(shape, lambda b: (0, 0), pipeline_mode=pl.Buffered(1))


# --------------------------------------------------------------------------
# Pallas kernels
# --------------------------------------------------------------------------
def _embed_ln_kernel(word_ref, pt_ref, g_ref, b_ref, o_ref, *, eps):
    # word: (1, S, H) gathered token embeddings; pt: (S, H) = pos + token_type0
    x = word_ref[...][0] + pt_ref[...]
    y = _layernorm(x, g_ref[...], b_ref[...], eps)
    o_ref[...] = y[None].astype(o_ref.dtype)


def embed_layernorm(word, pos_type, gamma, beta, eps=1e-12):
    B, S, H = word.shape
    return pl.pallas_call(
        functools.partial(_embed_ln_kernel, eps=eps),
        out_shape=jax.ShapeDtypeStruct((B, S, H), jnp.float32),
        grid=(B,),
        in_specs=[
            pl.BlockSpec((1, S, H), lambda b: (b, 0, 0)),
            _resident((S, H)),
            _resident((1, H)),
            _resident((1, H)),
        ],
        out_specs=pl.BlockSpec((1, S, H), lambda b: (b, 0, 0)),
        compiler_params=pltpu.CompilerParams(dimension_semantics=("parallel",)),
    )(word, pos_type, gamma.reshape(1, H), beta.reshape(1, H))


def _encoder_layer_kernel(x_ref, bias_ref, wqkv_ref, bqkv_ref, wo_ref, bo_ref,
                          g1_ref, b1_ref, wi_ref, bi_ref, wo2_ref, bo2_ref,
                          g2_ref, b2_ref, o_ref, *, n_heads, eps):
    bf16 = jnp.bfloat16
    x = x_ref[...][0].astype(jnp.float32)     # (S, H) fp32 block for this batch elem
    S, H = x.shape
    Dh = H // n_heads

    # hoist the additive-mask broadcast out of the unrolled head loop
    mb = jnp.broadcast_to(bias_ref[...][0], (S, S))          # (S, S) fp32

    # ---- fused QKV projection: one [H, 3H] matmul (bf16 MXU, fp32 accum);
    #      keep qkv in bf16 afterwards to halve intermediate pressure.
    qkv = (jnp.dot(x.astype(bf16), wqkv_ref[...],
                   preferred_element_type=jnp.float32)
           + bqkv_ref[...]).astype(bf16)                     # (S, 3H)

    # ---- multi-head self-attention; heads sliced in-register, per-head
    #      accumulation into the output projection (no concat / lane shuffles).
    wo = wo_ref[...]                                         # (H, H) bf16
    attn = jnp.broadcast_to(bo_ref[...], (S, H))             # fp32 acc, starts at bias
    for h in range(n_heads):                                 # static unrolled loop
        q = qkv[:, h * Dh:(h + 1) * Dh]
        k = qkv[:, H + h * Dh:H + (h + 1) * Dh]
        v = qkv[:, 2 * H + h * Dh:2 * H + (h + 1) * Dh]
        # 1/sqrt(Dh) is folded into the Q columns of wqkv at init time.
        s = jnp.dot(q, k.T, preferred_element_type=jnp.float32) + mb
        m = jnp.max(s, axis=-1, keepdims=True)
        e = jnp.exp(s - m)
        p = e * pl.reciprocal(jnp.sum(e, axis=-1, keepdims=True), approx=True)
        ctx_h = jnp.dot(p.astype(bf16), v, preferred_element_type=jnp.float32)
        attn = attn + jnp.dot(ctx_h.astype(bf16), wo[h * Dh:(h + 1) * Dh, :],
                              preferred_element_type=jnp.float32)

    # ---- attention output projection bias already in attn; residual + LN1 ----
    x1 = _layernorm(attn + x, g1_ref[...], b1_ref[...], eps)

    # ---- FFN: intermediate GELU + down-proj + residual + LayerNorm2 (fused) ----
    h_ff = _gelu(jnp.dot(x1.astype(bf16), wi_ref[...],
                         preferred_element_type=jnp.float32)
                 + bi_ref[...]).astype(bf16)
    ff = jnp.dot(h_ff, wo2_ref[...],
                 preferred_element_type=jnp.float32) + bo2_ref[...]
    x2 = _layernorm(ff + x1, g2_ref[...], b2_ref[...], eps)

    o_ref[...] = x2[None].astype(o_ref.dtype)


def encoder_layer(x, mask_bias, lp, *, n_heads, eps=1e-12, vmem_limit=None):
    B, S, H = x.shape
    I = lp["wi"].shape[1]

    # advisory cost estimate so XLA can overlap the per-layer weight DMA
    flops = int(B * (8 * S * H * H + 4 * S * S * H + 4 * S * H * I))
    transc = int(B * (n_heads * S * S + S * I))
    bytes_acc = int(2 * B * S * H * 4 + B * S * 4
                    + 2 * (3 * H * H + H * H + 2 * H * I)
                    + 4 * (3 * H + 7 * H + I))

    return pl.pallas_call(
        functools.partial(_encoder_layer_kernel, n_heads=n_heads, eps=eps),
        out_shape=jax.ShapeDtypeStruct((B, S, H), jnp.float32),
        grid=(B,),
        in_specs=[
            pl.BlockSpec((1, S, H), lambda b: (b, 0, 0)),   # x (per-batch slab)
            pl.BlockSpec((1, 1, S), lambda b: (b, 0, 0)),   # mask bias
            _resident((H, 3 * H)),                           # wqkv (bf16)
            _resident((1, 3 * H)),                           # bqkv
            _resident((H, H)),                               # wo   (bf16)
            _resident((1, H)),                               # bo
            _resident((1, H)),                               # ln1 gamma
            _resident((1, H)),                               # ln1 beta
            _resident((H, I)),                               # wi   (bf16)
            _resident((1, I)),                               # bi
            _resident((I, H)),                               # wo2  (bf16)
            _resident((1, H)),                               # bo2
            _resident((1, H)),                               # ln2 gamma
            _resident((1, H)),                               # ln2 beta
        ],
        out_specs=pl.BlockSpec((1, S, H), lambda b: (b, 0, 0)),
        compiler_params=pltpu.CompilerParams(
            dimension_semantics=("parallel",),
            vmem_limit_bytes=vmem_limit),
        cost_estimate=pl.CostEstimate(flops=flops, transcendentals=transc,
                                      bytes_accessed=bytes_acc),
    )(x, mask_bias,
      lp["wqkv"], lp["bqkv"].reshape(1, 3 * H),
      lp["wo"], lp["bo"].reshape(1, H),
      lp["ln1_g"].reshape(1, H), lp["ln1_b"].reshape(1, H),
      lp["wi"], lp["bi"].reshape(1, I),
      lp["wo2"], lp["bo2"].reshape(1, H),
      lp["ln2_g"].reshape(1, H), lp["ln2_b"].reshape(1, H))


def _pooler_classifier_kernel(cls_ref, pw_ref, pb_ref, ow_ref, ob_ref, o_ref):
    bf16 = jnp.bfloat16
    cls = cls_ref[...].astype(jnp.float32)                       # (B, H), seq pos 0
    pooled = jnp.tanh(jnp.dot(cls.astype(bf16), pw_ref[...],
                              preferred_element_type=jnp.float32) + pb_ref[...])
    # nn.Dropout(p=0.3): identity at inference time.
    # TODO(synk): training-mode dropout (random mask + 1/(1-p) scaling) not emitted.
    logits = jnp.dot(pooled.astype(bf16), ow_ref[...],
                     preferred_element_type=jnp.float32) + ob_ref[...]
    # Softmax(dim=1); padded classes carry -1e30 bias (fp32) -> exp underflows to 0.
    m = jnp.max(logits, axis=-1, keepdims=True)
    e = jnp.exp(logits - m)
    o_ref[...] = e * pl.reciprocal(jnp.sum(e, axis=-1, keepdims=True), approx=True)


def pooler_classifier(x, pw, pb, ow_pad, ob_pad):
    B, S, H = x.shape
    Cp = ow_pad.shape[1]
    return pl.pallas_call(
        _pooler_classifier_kernel,
        out_shape=jax.ShapeDtypeStruct((B, Cp), jnp.float32),
        grid=(1,),
        in_specs=[
            # squeeze the sequence dim and select position 0 (the [CLS] row)
            pl.BlockSpec((B, None, H), lambda i: (0, 0, 0)),
            pl.BlockSpec((H, H), lambda i: (0, 0), pipeline_mode=pl.Buffered(1)),
            pl.BlockSpec((1, H), lambda i: (0, 0), pipeline_mode=pl.Buffered(1)),
            pl.BlockSpec((H, Cp), lambda i: (0, 0), pipeline_mode=pl.Buffered(1)),
            pl.BlockSpec((1, Cp), lambda i: (0, 0), pipeline_mode=pl.Buffered(1)),
        ],
        out_specs=pl.BlockSpec((B, Cp), lambda i: (0, 0)),
    )(x, pw, pb.reshape(1, H), ow_pad, ob_pad.reshape(1, Cp))


# --------------------------------------------------------------------------
# Model: scaled-down BERT encoder + SentimentClassifier head
# --------------------------------------------------------------------------
def init_params(key, cfg):
    H, I, C = cfg["hidden"], cfg["intermediate"], cfg["n_classes"]
    nH = cfg["heads"]
    scale = 1.0 / float(H // nH) ** 0.5
    wdt = jnp.bfloat16  # matmul weights in bf16; bias/LN params in fp32

    def nrm(k, shape, dtype=jnp.float32):
        return (0.02 * jax.random.normal(k, shape, dtype=jnp.float32)).astype(dtype)

    keys = iter(jax.random.split(key, 16 + 8 * cfg["layers"]))
    params = {
        "embeddings": {
            "word": nrm(next(keys), (cfg["vocab"], H)),
            "pos": nrm(next(keys), (cfg["max_pos"], H)),
            "type": nrm(next(keys), (cfg["type_vocab"], H)),
            "ln_g": jnp.ones((H,), jnp.float32),
            "ln_b": jnp.zeros((H,), jnp.float32),
        },
        "layers": [],
        "pooler_w": nrm(next(keys), (H, H), wdt),
        "pooler_b": jnp.zeros((H,), jnp.float32),
    }

    # classifier weight/bias, lane-padded to C_PAD for a dense output store
    out_w = nrm(next(keys), (H, C))
    out_b = jnp.zeros((C,), jnp.float32)
    params["out_w_padded"] = (
        jnp.zeros((H, C_PAD), wdt).at[:, :C].set(out_w.astype(wdt)))
    params["out_b_padded"] = (
        jnp.full((C_PAD,), -1e30, jnp.float32).at[:C].set(out_b))

    for _ in range(cfg["layers"]):
        # fused Q|K|V weight; fold the 1/sqrt(Dh) attention scale into the
        # Q columns (and Q third of the bias) so the kernel never multiplies.
        wqkv = 0.02 * jax.random.normal(next(keys), (H, 3 * H), dtype=jnp.float32)
        wqkv = wqkv.at[:, :H].multiply(scale)
        bqkv = jnp.zeros((3 * H,), jnp.float32).at[:H].multiply(scale)
        params["layers"].append({
            "wqkv": wqkv.astype(wdt),
            "bqkv": bqkv,
            "wo": nrm(next(keys), (H, H), wdt),
            "bo": jnp.zeros((H,), jnp.float32),
            "ln1_g": jnp.ones((H,), jnp.float32),
            "ln1_b": jnp.zeros((H,), jnp.float32),
            "wi": nrm(next(keys), (H, I), wdt),
            "bi": jnp.zeros((I,), jnp.float32),
            "wo2": nrm(next(keys), (I, H), wdt),
            "bo2": jnp.zeros((H,), jnp.float32),
            "ln2_g": jnp.ones((H,), jnp.float32),
            "ln2_b": jnp.zeros((H,), jnp.float32),
        })
    return params


def sentiment_classifier_forward(params, input_ids, attention_mask, cfg):
    B, S = input_ids.shape
    H = cfg["hidden"]
    nH = cfg["heads"]
    vlimit = _scoped_vmem_limit()

    # ---- BERT embeddings: gather is plain-JAX glue; add+LayerNorm fused kernel
    emb = params["embeddings"]
    word = jnp.take(emb["word"], input_ids, axis=0)             # (B, S, H)
    pos_type = emb["pos"][:S] + emb["type"][0][None, :]         # token_type_ids = 0
    x = embed_layernorm(word, pos_type, emb["ln_g"], emb["ln_b"])

    # additive attention-mask bias, computed once per forward
    mask_bias = ((1.0 - attention_mask.astype(jnp.float32))
                 * jnp.float32(-10000.0)).reshape(B, 1, S)

    # ---- transformer encoder: one fused pallas_call per layer ----
    for lp in params["layers"]:
        x = encoder_layer(x, mask_bias, lp, n_heads=nH, vmem_limit=vlimit)

    # ---- pooler(tanh) + dropout(identity) + linear + Softmax(dim=1), one kernel;
    #      CLS row selected inside the kernel via a squeezed BlockSpec.
    probs_padded = pooler_classifier(x, params["pooler_w"], params["pooler_b"],
                                     params["out_w_padded"], params["out_b_padded"])
    return probs_padded[:, :cfg["n_classes"]]


# --------------------------------------------------------------------------
if __name__ == "__main__":
    cfg = dict(vocab=100, hidden=32, heads=2, intermediate=64, layers=2,
               max_pos=16, type_vocab=2, n_classes=3)
    B, S = 2, 8

    root = jax.random.PRNGKey(0)
    k_param, k_ids = jax.random.split(root)
    params = init_params(k_param, cfg)

    input_ids = jax.random.randint(k_ids, (B, S), 0, cfg["vocab"], dtype=jnp.int32)
    attention_mask = jnp.ones((B, S), dtype=jnp.int32)

    probs = sentiment_classifier_forward(params, input_ids, attention_mask, cfg)
    probs = jax.block_until_ready(probs)

    assert probs.shape == (B, cfg["n_classes"])
    assert bool(jnp.all(jnp.isfinite(probs)))
    print("KERNEL_OK")
</pallas_src>

<mosaic_0001>
module attributes {stable_mosaic.version = 11 : i64} {
  func.func @_embed_ln_kernel(%arg0: i32, %arg1: memref<1x8x32xf32, #tpu.memory_space<vmem>>, %arg2: memref<8x32xf32, #tpu.memory_space<vmem>>, %arg3: memref<1x32xf32, #tpu.memory_space<vmem>>, %arg4: memref<1x32xf32, #tpu.memory_space<vmem>>, %arg5: memref<1x8x32xf32, #tpu.memory_space<vmem>>) attributes {dimension_semantics = [#tpu.dimension_semantics<parallel>], iteration_bounds = array<i64: 2>, scalar_prefetch = 0 : i64, scratch_operands = 0 : i64, tpu.core_type = #tpu.core_type<tc>, window_params = [{transform_indices = @transform_0, window_bounds = array<i64: 1, 8, 32>}, {pipeline_mode = #tpu.pipeline_mode<synchronous>, transform_indices = @transform_1, window_bounds = array<i64: 8, 32>}, {pipeline_mode = #tpu.pipeline_mode<synchronous>, transform_indices = @transform_2, window_bounds = array<i64: 1, 32>}, {pipeline_mode = #tpu.pipeline_mode<synchronous>, transform_indices = @transform_3, window_bounds = array<i64: 1, 32>}, {transform_indices = @transform_4, window_bounds = array<i64: 1, 8, 32>}]} {
    %c0 = arith.constant 0 : index
    %c0_0 = arith.constant 0 : index
    %c0_1 = arith.constant 0 : index
    %0 = vector.load %arg1[%c0, %c0_0, %c0_1] : memref<1x8x32xf32, #tpu.memory_space<vmem>>, vector<1x8x32xf32>
    %1 = vector.shape_cast %0 : vector<1x8x32xf32> to vector<8x32xf32>
    %c0_2 = arith.constant 0 : index
    %c0_3 = arith.constant 0 : index
    %2 = vector.load %arg2[%c0_2, %c0_3] : memref<8x32xf32, #tpu.memory_space<vmem>>, vector<8x32xf32>
    %3 = arith.addf %1, %2 : vector<8x32xf32>
    %c0_4 = arith.constant 0 : index
    %c0_5 = arith.constant 0 : index
    %4 = vector.load %arg3[%c0_4, %c0_5] : memref<1x32xf32, #tpu.memory_space<vmem>>, vector<1x32xf32>
    %c0_6 = arith.constant 0 : index
    %c0_7 = arith.constant 0 : index
    %5 = vector.load %arg4[%c0_6, %c0_7] : memref<1x32xf32, #tpu.memory_space<vmem>>, vector<1x32xf32>
    %cst = arith.constant dense<0.000000e+00> : vector<8xf32>
    %6 = vector.multi_reduction <add>, %3, %cst [1] : vector<8x32xf32> to vector<8xf32>
    %7 = vector.shape_cast %6 : vector<8xf32> to vector<8x1xf32>
    %cst_8 = arith.constant 3.200000e+01 : f32
    %8 = vector.broadcast %cst_8 : f32 to vector<8x1xf32>
    %9 = arith.divf %7, %8 : vector<8x1xf32>
    %10 = vector.broadcast %9 : vector<8x1xf32> to vector<8x32xf32>
    %11 = arith.subf %3, %10 : vector<8x32xf32>
    %12 = arith.mulf %11, %11 : vector<8x32xf32>
    %cst_9 = arith.constant dense<0.000000e+00> : vector<8xf32>
    %13 = vector.multi_reduction <add>, %12, %cst_9 [1] : vector<8x32xf32> to vector<8xf32>
    %14 = vector.shape_cast %13 : vector<8xf32> to vector<8x1xf32>
    %cst_10 = arith.constant 3.200000e+01 : f32
    %15 = vector.broadcast %cst_10 : f32 to vector<8x1xf32>
    %16 = arith.divf %14, %15 : vector<8x1xf32>
    %17 = vector.broadcast %9 : vector<8x1xf32> to vector<8x32xf32>
    %18 = arith.subf %3, %17 : vector<8x32xf32>
    %cst_11 = arith.constant 9.99999996E-13 : f32
    %19 = vector.broadcast %cst_11 : f32 to vector<8x1xf32>
    %20 = arith.addf %16, %19 : vector<8x1xf32>
    %21 = math.rsqrt %20 : vector<8x1xf32>
    %22 = vector.broadcast %21 : vector<8x1xf32> to vector<8x32xf32>
    %23 = arith.mulf %18, %22 : vector<8x32xf32>
    %24 = vector.broadcast %4 : vector<1x32xf32> to vector<8x32xf32>
    %25 = arith.mulf %23, %24 : vector<8x32xf32>
    %26 = vector.broadcast %5 : vector<1x32xf32> to vector<8x32xf32>
    %27 = arith.addf %25, %26 : vector<8x32xf32>
    %28 = vector.shape_cast %27 : vector<8x32xf32> to vector<1x8x32xf32>
    %c0_12 = arith.constant 0 : index
    %c0_13 = arith.constant 0 : index
    %c0_14 = arith.constant 0 : index
    %29 = vector.load %arg5[%c0_12, %c0_13, %c0_14] : memref<1x8x32xf32, #tpu.memory_space<vmem>>, vector<1x8x32xf32>
    tpu.vector_store %arg5[%c0_12, %c0_13, %c0_14], %28 {strides = array<i32>} : memref<1x8x32xf32, #tpu.memory_space<vmem>>, vector<1x8x32xf32>,
    return
  }
  func.func @transform_0(%arg0: i32) -> (i32, i32, i32) {
    %c0_i32 = arith.constant 0 : i32
    %c0_i32_0 = arith.constant 0 : i32
    %c0_i32_1 = arith.constant 0 : i32
    return %arg0, %c0_i32, %c0_i32_0 : i32, i32, i32
  }
  func.func @transform_1(%arg0: i32) -> (i32, i32) {
    %c0_i32 = arith.constant 0 : i32
    %c0_i32_0 = arith.constant 0 : i32
    %c0_i32_1 = arith.constant 0 : i32
    return %c0_i32, %c0_i32_0 : i32, i32
  }
  func.func @transform_2(%arg0: i32) -> (i32, i32) {
    %c0_i32 = arith.constant 0 : i32
    %c0_i32_0 = arith.constant 0 : i32
    %c0_i32_1 = arith.constant 0 : i32
    return %c0_i32, %c0_i32_0 : i32, i32
  }
  func.func @transform_3(%arg0: i32) -> (i32, i32) {
    %c0_i32 = arith.constant 0 : i32
    %c0_i32_0 = arith.constant 0 : i32
    %c0_i32_1 = arith.constant 0 : i32
    return %c0_i32, %c0_i32_0 : i32, i32
  }
  func.func @transform_4(%arg0: i32) -> (i32, i32, i32) {
    %c0_i32 = arith.constant 0 : i32
    %c0_i32_0 = arith.constant 0 : i32
    %c0_i32_1 = arith.constant 0 : i32
    return %arg0, %c0_i32, %c0_i32_0 : i32, i32, i32
  }
}

</mosaic_0001>

<bundles_post_ra>
// kernel: tpu_custom_call.1
= control target key start
LH: loop header
LB: loop body
LE: loop exit
PB: predicated region body
PF: predicated region fallthrough
CT: control target
= control target key end

     0   :  { %9 = vsyncpa [#allocation3], 0  ;;  %s757_s0 = inlined_call_operand.hbm [shape: f32[2,8,32], index: 0, kind: input, shape index: {}]   ;;  %s758_s1 = inlined_call_operand.hbm [shape: f32[8,32], index: 1, kind: input, shape index: {}]   ;;  %s759_s2 = inlined_call_operand.vmem [shape: f32[1,32], index: 2, kind: input, shape index: {}]   ;;  %s760_s3 = inlined_call_operand.vmem [shape: f32[1,32], index: 3, kind: input, shape index: {}]   ;;  %s761_s4 = inlined_call_operand.hbm [shape: f32[2,8,32], index: 4, kind: output, shape index: {}]  }
   0x1   :  { %11 = vsyncpa [#allocation3 + $0x1], 0 }
   0x2   :  { %12 = vsyncpa [#allocation6], 0 }
   0x3   :  { %13 = vsyncpa [#allocation4], 0 }
   0x4   :  { %15 = vsyncpa [#allocation4 + $0x1], 0  ;;  %s582_s15 = smov 0   ;;  %s584_s16 = smov 0  }
   0x5   :  { %s586_s17 = smov 0   ;;  %s588_s18 = smov 0  }
   0x6 LB: > { %s603_s19 = sadd.s32 4294967295, %s552_s18   ;;  %s355_s20 = sadd.s32 4294967294, %s552_s18   ;;  %s552_s18 = sphi %s588_s18, %s784_s18   ;;  %s548_s17 = sphi %s586_s17, %s783_s17   ;;  %s544_s16 = sphi %s584_s16, %s782_s16   ;;  %s540_s15 = sphi %s582_s15, %s781_s15  }
   0x7   : > { %p41_p0 = scmp.ne.s32.totalorder %s544_s16, %s540_s15  ;;  %p762_p1 = scmp.eq.s32.totalorder %s603_s19, 0 }
   0x8   : > { %p134_p3 = scmp.eq.s32.totalorder %s355_s20, 1  ;;  %p356_p5 = scmp.ge.s32.totalorder %s552_s18, 1 }
   0x9   : > { %p612_p4 = por %p762_p1, %p41_p0  ;;  %p141_p7 = scmp.lt.s32.totalorder %s552_s18, 3 }
   0xa   : > { %p617_p6 = por %p134_p3, %p41_p0  ;;  %s554_s24 = smov [#allocation5]  }
   0xb   : > { %s766_s21 = scalar_select %p612_p4, 1, 0 }
   0xc   : > { %s767_s22 = scalar_select %p617_p6, 1, 0 }
   0xd   : > { %p622_p8 = pnand %p356_p5, %p141_p7  ;;  %s154_s25 = sshll.u32 %s554_s24, 4  ;;  %s155_s25 = int_to_ptr.vmem [resolvable:$true] %s154_s25 }
   0xe   : > { %s630_s26 = sadd.s32 1, %s552_s18   ;;  %s28_s30 = sadd.s32 1, %s548_s17 }
   0xf   : > { %s768_s23 = scalar_select %p622_p8, 1, 0 }
  0x10   : > { %p379_p10 = pneg %p622_p8  ;;  %s25_s28 = ssub.s32 %s552_s18, %s630_s26 }
  0x11   : > { %p640_p12 = scmp.eq.s32.totalorder %s25_s28, 0  ;;  %p35_p13 = scmp.ne.s32.totalorder %s548_s17, %s544_s16 }
  0x12   : > { %p634_p11 = pnand %p379_p10, %p762_p1  ;;  %s441_s5 = scalar_lea.vmem %s155_s25, 128 }
  0x13   : > { %p442_p3 = scmp.ne.s32.totalorder %s155_s25, %s441_s5  ;;  %p449_p9 = scmp.lt.s32.totalorder %s155_s25, %s155_s25 }
  0x14   : > { %p432_p0 = pneg %p634_p11  ;;  %p450_p2 = scmp.lt.s32.totalorder %s441_s5, %s441_s5 }
  0x16   : > { %p444_p5 = pnand %p442_p3, %p432_p0  ;;  %p451_p10 = por %p450_p2, %p449_p9 }
  0x18   : > { %p445_p7 = pneg %p444_p5 }
  0x1a   : > { %p452_p1 = pnand %p451_p10, %p445_p7 }
  0x1c   : > { %455 = shalt.err (!%p452_p1)
}
  0x1d   : > { %382 = dma.hbm_to_vmem [thread:$0]  (!%p634_p11), %s758_s1, 128, %s155_s25, [#allocation6]  }
  0x1e   : > { %s657_s8 = scalar_select %p640_p12, %s548_s17, %s28_s30  }
  0x1f   : > { %p36_p1 = scmp.eq.s32.totalorder %s552_s18, 0  ;;  %p771_p2 = scmp.eq.s32.totalorder %s603_s19, 1 }
  0x20   : > { %p392_p0 = scmp.lt.s32.totalorder %s552_s18, 2  ;;  %s171_s10 = sand.u32 1, %s548_s17  }
  0x21   : > { %p665_p9 = por %p771_p2, %p35_p13  ;;  %p37_p3 = por %p36_p1, %p35_p13 }
  0x22   : > { %s359_s11 = sshll.u32 %s171_s10, 3  ;;  %s360_s12 = sshll.u32 %s552_s18, 7 }
  0x23   : > { %s772_s9 = scalar_select %p665_p9, 1, 0 }
  0x24   : > { %s678_s20 = scalar_lea.hbm %s757_s0, %s360_s12  ;;  %s175_s24 = scalar_lea.vmem [#allocation2], %s359_s11 }
  0x25   : > { %s182_s25 = sshll.u32 %s175_s24, 4  ;;  %p680_p11 = pnand %p392_p0, %p37_p3  ;;  %s183_s25 = int_to_ptr.vmem [resolvable:$true] %s182_s25 }
  0x26   : > { %s172_s28 = scalar_lea.sflag [#allocation3], %s171_s10  ;;  %s456_s29 = scalar_lea.hbm %s678_s20, 128 }
  0x27   : > { %p457_p12 = scmp.ne.s32.totalorder %s678_s20, %s456_s29  ;;  %p458_p13 = pneg %p680_p11 }
  0x28   : > { %s461_s6 = scalar_lea.hbm %s757_s0, 256  ;;  %p462_p10 = scmp.lt.s32.totalorder %s678_s20, %s757_s0 }
  0x29   : > { %p459_p5 = pnand %p458_p13, %p457_p12  ;;  %p463_p1 = scmp.lt.s32.totalorder %s461_s6, %s456_s29 }
  0x2b   : > { %p460_p7 = pneg %p459_p5  ;;  %p464_p2 = por %p463_p1, %p462_p10 }
  0x2d   : > { %p465_p0 = pnand %p464_p2, %p460_p7 }
  0x2f   : > { %468 = shalt.err (!%p465_p0)
}
  0x30   : > { %s469_s12 = scalar_lea.vmem %s183_s25, 128  ;;  %s555_s10 = smov [#allocation2]  }
  0x31   : > { %p470_p3 = scmp.ne.s32.totalorder %s183_s25, %s469_s12  ;;  %s474_s13 = sshll.u32 %s555_s10, 4  ;;  %s475_s13 = int_to_ptr.vmem [resolvable:$false] %s474_s13 }
  0x32   : > { %s476_s14 = scalar_lea.vmem %s475_s13, 256  ;;  %p477_p12 = scmp.lt.s32.totalorder %s183_s25, %s475_s13 }
  0x33   : > { %p472_p6 = pnand %p470_p3, %p458_p13  ;;  %p478_p5 = scmp.lt.s32.totalorder %s476_s14, %s469_s12 }
  0x35   : > { %p473_p9 = pneg %p472_p6  ;;  %p479_p4 = por %p478_p5, %p477_p12 }
  0x37   : > { %p480_p8 = pnand %p479_p4, %p473_p9 }
  0x39   : > { %483 = shalt.err (!%p480_p8)
}
  0x3a   : > { %386 = dma.hbm_to_vmem [thread:$0]  (!%p680_p11), %s678_s20, 128, %s183_s25, %s172_s28  }
  0x3b   : > { %p774_p7 = scmp.ne.s32.totalorder %s768_s23, 0 }
  0x3c   : > { %s701_s24 = sand.u32 (!%p774_p7), 1, %s544_s16   ;;  %p775_p6 = scmp.ne.s32.totalorder (!%p774_p7), %s766_s21, 0 }
  0x3d   : > { %191 = sbr.rel (%p774_p7) target bundleno = 394 (0x18a), region = 36  ;;  %s362_s29 = sshll.u32 (!%p774_p7), %s701_s24, 3 }
  0x3e   : > { %s194_s30 = scalar_lea.sflag (!%p774_p7), [#allocation3], %s701_s24  ;;  %s197_s5 = scalar_lea.vmem (!%p774_p7), [#allocation2], %s362_s29 }
  0x42   : > { %527 = dma.done.wait (%p775_p6), %s194_s30, 128  }
  0x43   : > { %529 = vsyncadd (%p775_p6), %s194_s30, 4294967168  ;;  %p776_p4 = scmp.eq.s32.totalorder %s603_s19, 0 }
  0x45   : > { %531 = dma.done.wait (%p776_p4), [#allocation6], 128   ;;  %p777_p8 = pmov %p776_p4 }
  0x46   : > { %v226_v0 = vld [vmem:[%s197_s5] sm:$0xff]  ;;  %v227_v1 = vld [vmem:[#allocation5] sm:$0xff]  ;;  %vm231_vm0 = vcmask 261120   ;;  %s368_s27 = sshll.u32 %s603_s19, 7  ;;  %s225_s28 = scalar_lea.vmem [#allocation7], %s362_s29 }
  0x47   : > { %533 = vsyncadd (%p777_p8), [#allocation6], 4294967168  ;;  %v228_v2 = vadd.f32 %v227_v1, %v226_v0  ;;  %v365_v13 = vld [vmem:[%s759_s2] ss:$0 sm:$0xff]  ;;  %s275_s6 = sshll.u32 %s225_s28, 4  ;;  %s273_s12 = scalar_lea.hbm %s761_s4, %s368_s27  ;;  %s276_s6 = int_to_ptr.vmem [resolvable:$true] %s275_s6 }
  0x48   : > { %v366_v15 = vld [vmem:[%s760_s3] ss:$0 sm:$0xff]  ;;  %s262_s10 = scalar_lea.sflag [#allocation4], %s701_s24  ;;  %s484_s13 = scalar_lea.vmem %s276_s6, 128 }
  0x49   : > { %v232_v3 = vsel %vm231_vm0, %v228_v2, 0.0  ;;  %p485_p9 = scmp.ne.s32.totalorder %s276_s6, %s484_s13  ;;  %p778_p11 = scmp.ne.s32.totalorder %s772_s9, 0 }
  0x4a   : > { %233 = vadd.xlane.f32.xlu0 %v232_v3  ;;  %s556_s14 = smov [#allocation7]  }
  0x4b   : > { %p486_p13 = pnand %p485_p9, %p778_p11  ;;  %s488_s30 = sshll.u32 %s556_s14, 4  ;;  %s489_s30 = int_to_ptr.vmem [resolvable:$false] %s488_s30 }
  0x4c   : > { %s490_s19 = scalar_lea.vmem %s489_s30, 256  ;;  %p491_p1 = scmp.lt.s32.totalorder %s276_s6, %s489_s30 }
  0x4d   : > { %p487_p10 = pneg %p486_p13  ;;  %p492_p2 = scmp.lt.s32.totalorder %s490_s19, %s484_s13 }
  0x4f   : > { %p493_p0 = por %p492_p2, %p491_p1 }
  0x51   : > { %p494_p3 = pnand %p493_p0, %p487_p10 }
  0xd3   : > { %v234_v4 = vpop.xlane.xlu0 %233 }
  0xd4   : > { %v236_v5 = vmul.f32 0.03125, %v234_v4 }
  0xd6   : > { %v237_v6 = vsub.f32 %v228_v2, %v236_v5 }
  0xd8   : > { %v238_v7 = vmul.f32 %v237_v6, %v237_v6 }
  0xda   : > { %v239_v8 = vsel %vm231_vm0, %v238_v7, 0.0 }
  0xdb   : > { %240 = vadd.xlane.f32.xlu0 %v239_v8 }
 0x164   : > { %v241_v9 = vpop.xlane.xlu0 %240 }
 0x165   : > { %v242_v10 = vmul.f32 0.03125, %v241_v9 }
 0x167   : > { %v243_v11 = vadd.f32 1e-12, %v242_v10 }
 0x169   : > { %428 = vrsqrt.f32 %v243_v11 }
 0x176   : > { %v429_v12 = vpop.eup %428 }
 0x177   : > { %v245_v14 = vmul.f32 %v429_v12, %v237_v6 }
 0x179   : > { %v252_v16 = vmul.f32 %v365_v13, %v245_v14 }
 0x17b   : > { %v259_v17 = vadd.f32 %v366_v15, %v252_v16 }
 0x17d   : > { %260 = vst.msk [vmem:[%s225_s28] sm:$0xff] %vm231_vm0, %v259_v17 }
 0x17e   : > { %497 = shalt.err (!%p494_p3)
}
 0x17f   : > { %s498_s29 = scalar_lea.hbm %s273_s12, 128  ;;  %s502_s21 = scalar_lea.hbm %s761_s4, 256 }
 0x180   : > { %p499_p12 = scmp.ne.s32.totalorder %s273_s12, %s498_s29  ;;  %p503_p6 = scmp.lt.s32.totalorder %s273_s12, %s761_s4 }
 0x181   : > { %p504_p4 = scmp.lt.s32.totalorder %s502_s21, %s498_s29 }
 0x182   : > { %p500_p5 = pnand %p499_p12, %p778_p11 }
 0x183   : > { %p505_p8 = por %p504_p4, %p503_p6 }
 0x184   : > { %p501_p7 = pneg %p500_p5 }
 0x186   : > { %p506_p9 = pnand %p505_p8, %p501_p7 }
 0x188   : > { %509 = shalt.err (!%p506_p9)
}
 0x189   : > { %377 = dma.vmem_to_hbm [thread:$0]  (%p778_p11), %s276_s6, 128, %s273_s12, %s262_s10  }
 0x18a PF: > { %s287_s25 = sand.u32 1, %s540_s15   ;;  %p779_p13 = scmp.ne.s32.totalorder %s767_s22, 0 }
 0x18b   : > { %p780_p10 = scmp.ge.s32.totalorder %s552_s18, 2  ;;  %s288_s27 = scalar_lea.sflag [#allocation4], %s287_s25 }
 0x18d   : > { %p388_p1 = pnand %p780_p10, %p779_p13 }
 0x18f   : > { %p389_p2 = pneg %p388_p1 }
 0x191   : > { %535 = dma.done.wait (%p389_p2), %s288_s27, 128  }
 0x192   : > { %537 = vsyncadd (%p389_p2), %s288_s27, 4294967168  ;;  %p18_p0 = scmp.ge.s32.totalorder %s630_s26, 4   ;;  %s781_s15 = smov %s544_s16 }
 0x193   : > { %s782_s16 = smov %s548_s17  ;;  %s783_s17 = smov %s657_s8 }
 0x194   : > { %s784_s18 = smov %s630_s26  ;;  %20 = sbr.rel (!%p18_p0) target bundleno = 6 (0x6), region = 85 }
 0x199   :  { %293 = vsyncpa [#allocation3], 1 }
 0x19a   :  { %295 = vsyncpa [#allocation3 + $0x1], 1 }
 0x19b   :  { %296 = vsyncpa [#allocation6], 1 }
 0x19c   :  { %297 = vsyncpa [#allocation4], 1 }
 0x19d   :  { %299 = vsyncpa [#allocation4 + $0x1], 1 }

</bundles_post_ra>
